<compile_context>
chip_gen: v6e
topology: v6e:2x2x1
jax: 0.10.0
libtpu: 0.0.40
codegen_flags: <defaults>
</compile_context>

<pallas_src>
import functools

import jax
import jax.numpy as jnp
from jax.experimental import pallas as pl
from jax.experimental.pallas import tpu as pltpu

HIDDEN = 64
IN_SIZE = 1
OUT_SIZE = 1


def _round_up(n, m):
    return ((n + m - 1) // m) * m


def _chip_generation():
    """Best-effort TPU generation detection (5, 6 or 7); defaults to 6."""
    try:
        kind = jax.devices()[0].device_kind.lower()
    except Exception:  # pragma: no cover - interpret mode / no devices
        return 6
    if "v7" in kind:
        return 7
    if "v6" in kind:
        return 6
    if "v5e" in kind or "v5 lite" in kind or "v5lite" in kind:
        return 5
    return 6


def _choose_tiling(batch, target_tile, *, want_two_tiles):
    """Pick (tile, n_tiles, padded_batch) with batch on lanes (128-aligned).

    The tile is derived from the target grid size so padding waste is bounded
    by <128 lanes per tile; on v7x we force >=2 tiles so both TensorCores
    along the "parallel" grid axis get work.
    """
    target_tile = max(128, _round_up(target_tile, 128))
    min_tiles = 2 if (want_two_tiles and batch > 128) else 1
    n = max(min_tiles, pl.cdiv(batch, target_tile))
    if want_two_tiles and n > 1 and n % 2:
        n += 1  # even tile count -> balanced split across the 2 TCs
    tile = _round_up(pl.cdiv(batch, n), 128)
    n_tiles = max(min_tiles, pl.cdiv(batch, tile))
    padded_batch = n_tiles * tile
    return tile, n_tiles, padded_batch


def mlp_kernel(x_ref,
               w1_ref, b1_ref,
               w2_ref, b2_ref,
               w3_ref, b3_ref,
               w4_ref, b4_ref,
               o_ref, *, mxu_dtype, layer4_on_mxu):
    # x_ref: (1, TB) f32 -- batch on lanes.
    x = x_ref[...]

    # Layer 1 (in_features=1): K=1 matmul wastes an MXU pass; do the outer
    # product on the VPU via broadcasting: (H,1)*(1,TB) + (H,1) -> (H,TB).
    h = jnp.maximum(w1_ref[...] * x + b1_ref[...], 0.0)

    # Layers 2 and 3: real 64x64 MXU matmuls (bf16 inputs, f32 accumulate),
    # N = batch_tile lanes.  Weights arrive already in mxu_dtype.
    h = jnp.dot(w2_ref[...], h.astype(mxu_dtype),
                preferred_element_type=jnp.float32) + b2_ref[...]
    h = jnp.maximum(h, 0.0)

    h = jnp.dot(w3_ref[...], h.astype(mxu_dtype),
                preferred_element_type=jnp.float32) + b3_ref[...]
    h = jnp.maximum(h, 0.0)

    if layer4_on_mxu:
        # v6e/v7x: shift ~1/3 of the remaining VALU work to the idle MXU.
        # (1,64)@(64,TB) -> (1,TB), f32 accumulate.
        out = jnp.dot(w4_ref[...], h.astype(mxu_dtype),
                      preferred_element_type=jnp.float32) + b4_ref[...]
    else:
        # v5e: VPU multiply + cross-sublane (XLU) reduce, MXU kept for the
        # two genuine 64x64 matmuls.  (H,1)*(H,TB) -> sum over features.
        out = jnp.sum(w4_ref[...] * h, axis=0, keepdims=True) + b4_ref[...]

    o_ref[...] = out.astype(o_ref.dtype)


def init_params(key):
    """nn.Linear-style init, PyTorch layout: W is (out_features, in_features)."""
    def linear(key, fan_in, fan_out):
        kw, kb = jax.random.split(key)
        bound = 1.0 / (fan_in ** 0.5)
        w = jax.random.uniform(kw, (fan_out, fan_in), jnp.float32, -bound, bound)
        b = jax.random.uniform(kb, (fan_out,), jnp.float32, -bound, bound)
        return w, b

    k1, k2, k3, k4 = jax.random.split(key, 4)
    w1, b1 = linear(k1, IN_SIZE, HIDDEN)   # (64, 1), (64,)
    w2, b2 = linear(k2, HIDDEN, HIDDEN)    # (64, 64), (64,)
    w3, b3 = linear(k3, HIDDEN, HIDDEN)    # (64, 64), (64,)
    w4, b4 = linear(k4, HIDDEN, OUT_SIZE)  # (1, 64), (1,)
    return (w1, b1, w2, b2, w3, b3, w4, b4)


def mlp_forward(l_tilde, params, *, tile_b=None, use_bf16=True,
                layer4_on_mxu=None):
    """l_tilde: (B,) float32 -> (B,) float32."""
    w1, b1, w2, b2, w3, b3, w4, b4 = params
    B = l_tilde.shape[0]

    gen = _chip_generation()
    if tile_b is None:
        # v5e: single vst slot -> cap the tile; v6e/v7x tolerate bigger tiles.
        tile_b = 1024 if gen == 5 else 2048
    if layer4_on_mxu is None:
        # 256-wide MXU on v6e/v7x has slack at 64-wide matmuls; v5e keeps
        # the M=1 layer on the VPU/XLU.
        layer4_on_mxu = gen >= 6

    tile, n_tiles, padded_b = _choose_tiling(B, tile_b, want_two_tiles=(gen == 7))

    x = l_tilde.reshape(1, B).astype(jnp.float32)  # == unsqueeze(-1), transposed
    if padded_b != B:
        x = jnp.pad(x, ((0, 0), (0, padded_b - B)))

    mxu_dtype = jnp.bfloat16 if use_bf16 else jnp.float32
    w2_k = w2.astype(mxu_dtype)   # only MXU operands get narrowed
    w3_k = w3.astype(mxu_dtype)

    # Column-vector layouts for VPU broadcasts inside the kernel.
    b1c = b1.reshape(HIDDEN, 1)
    b2c = b2.reshape(HIDDEN, 1)
    b3c = b3.reshape(HIDDEN, 1)
    b4c = b4.reshape(1, 1)
    if layer4_on_mxu:
        w4_k = w4.reshape(OUT_SIZE, HIDDEN).astype(mxu_dtype)   # (1, 64) MXU operand
        w4_spec_shape = (OUT_SIZE, HIDDEN)
    else:
        w4_k = w4.reshape(OUT_SIZE, HIDDEN).T                   # (64, 1) f32 VPU operand
        w4_spec_shape = (HIDDEN, OUT_SIZE)

    # Constant (0,0) index_map keeps each weight/bias tile VMEM-resident
    # across the whole grid (no per-step re-DMA).
    const = lambda shape: pl.BlockSpec(shape, lambda i: (0, 0))

    out = pl.pallas_call(
        functools.partial(mlp_kernel, mxu_dtype=mxu_dtype,
                          layer4_on_mxu=layer4_on_mxu),
        out_shape=jax.ShapeDtypeStruct((1, padded_b), jnp.float32),
        grid_spec=pltpu.PrefetchScalarGridSpec(
            num_scalar_prefetch=0,
            grid=(n_tiles,),
            in_specs=[
                pl.BlockSpec((1, tile), lambda i: (0, i)),   # x (batch on lanes)
                const((HIDDEN, 1)),                          # w1 column
                const((HIDDEN, 1)),                          # b1
                const((HIDDEN, HIDDEN)),                     # w2
                const((HIDDEN, 1)),                          # b2
                const((HIDDEN, HIDDEN)),                     # w3
                const((HIDDEN, 1)),                          # b3
                const(w4_spec_shape),                        # w4
                const((1, 1)),                               # b4
            ],
            out_specs=pl.BlockSpec((1, tile), lambda i: (0, i)),  # lane-dense
        ),
        compiler_params=pltpu.CompilerParams(
            dimension_semantics=("parallel",),   # shards tiles across TCs on v7x
            vmem_limit_bytes=32 * 1024 * 1024,   # headroom for tile sweeps (safe on all gens)
        ),
    )(x, w1, b1c, w2_k, b2c, w3_k, b3c, w4_k, b4c)

    return out[0, :B]  # drop padding; == squeeze(-1)


def mlp_reference(l_tilde, params):
    w1, b1, w2, b2, w3, b3, w4, b4 = params
    h = l_tilde.reshape(-1, 1)
    h = jnp.maximum(h @ w1.T + b1, 0.0)
    h = jnp.maximum(h @ w2.T + b2, 0.0)
    h = jnp.maximum(h @ w3.T + b3, 0.0)
    return (h @ w4.T + b4).reshape(-1)


if __name__ == "__main__":
    key = jax.random.PRNGKey(0)
    k_params, k_small, k_mid = jax.random.split(key, 3)

    params = init_params(k_params)

    # Small batch: pads to one 128-lane tile, single grid step.
    B_small = 16
    x_small = jax.random.uniform(k_small, (B_small,), jnp.float32, 0.5, 1.5)
    y_small_ref = mlp_reference(x_small, params)

    # Exact-f32 path (tight tolerance) -- validates the kernel math.
    y_small_f32 = jax.block_until_ready(
        mlp_forward(x_small, params, use_bf16=False))
    assert y_small_f32.shape == (B_small,)
    assert jnp.allclose(y_small_f32, y_small_ref, atol=1e-4, rtol=1e-4), \
        "f32 small mismatch"

    # Default path (bf16 MXU inputs, f32 accumulation) -- looser tolerance.
    y_small_bf16 = jax.block_until_ready(mlp_forward(x_small, params))
    assert float(jnp.max(jnp.abs(y_small_bf16 - y_small_ref))) < 5e-2, \
        "bf16 small mismatch"

    # Awkward batch: exercises the multi-tile grid + padding-minimizing tile
    # choice (tile_b=256 forces n_tiles > 1 even at this modest size).
    B_mid = 640
    x_mid = jax.random.uniform(k_mid, (B_mid,), jnp.float32, 0.5, 1.5)
    y_mid_ref = mlp_reference(x_mid, params)

    y_mid_f32 = jax.block_until_ready(
        mlp_forward(x_mid, params, tile_b=256, use_bf16=False))
    assert y_mid_f32.shape == (B_mid,)
    assert jnp.allclose(y_mid_f32, y_mid_ref, atol=1e-4, rtol=1e-4), \
        "f32 multi-tile mismatch"

    y_mid_bf16 = jax.block_until_ready(mlp_forward(x_mid, params, tile_b=256))
    assert float(jnp.max(jnp.abs(y_mid_bf16 - y_mid_ref))) < 5e-2, \
        "bf16 multi-tile mismatch"

    print("KERNEL_OK")
</pallas_src>

<mosaic_0001>
module attributes {stable_mosaic.version = 11 : i64} {
  func.func @mlp_kernel(%arg0: i32, %arg1: memref<1x128xf32, #tpu.memory_space<vmem>>, %arg2: memref<64x1xf32, #tpu.memory_space<vmem>>, %arg3: memref<64x1xf32, #tpu.memory_space<vmem>>, %arg4: memref<64x64xf32, #tpu.memory_space<vmem>>, %arg5: memref<64x1xf32, #tpu.memory_space<vmem>>, %arg6: memref<64x64xf32, #tpu.memory_space<vmem>>, %arg7: memref<64x1xf32, #tpu.memory_space<vmem>>, %arg8: memref<1x64xf32, #tpu.memory_space<vmem>>, %arg9: memref<1x1xf32, #tpu.memory_space<vmem>>, %arg10: memref<1x128xf32, #tpu.memory_space<vmem>>) attributes {dimension_semantics = [#tpu.dimension_semantics<parallel>], iteration_bounds = array<i64: 1>, scalar_prefetch = 0 : i64, scratch_operands = 0 : i64, tpu.core_type = #tpu.core_type<tc>, window_params = [{transform_indices = @transform_0, window_bounds = array<i64: 1, 128>}, {pipeline_mode = #tpu.pipeline_mode<synchronous>, transform_indices = @transform_1, window_bounds = array<i64: 64, 1>}, {pipeline_mode = #tpu.pipeline_mode<synchronous>, transform_indices = @transform_2, window_bounds = array<i64: 64, 1>}, {pipeline_mode = #tpu.pipeline_mode<synchronous>, transform_indices = @transform_3, window_bounds = array<i64: 64, 64>}, {pipeline_mode = #tpu.pipeline_mode<synchronous>, transform_indices = @transform_4, window_bounds = array<i64: 64, 1>}, {pipeline_mode = #tpu.pipeline_mode<synchronous>, transform_indices = @transform_5, window_bounds = array<i64: 64, 64>}, {pipeline_mode = #tpu.pipeline_mode<synchronous>, transform_indices = @transform_6, window_bounds = array<i64: 64, 1>}, {pipeline_mode = #tpu.pipeline_mode<synchronous>, transform_indices = @transform_7, window_bounds = array<i64: 1, 64>}, {pipeline_mode = #tpu.pipeline_mode<synchronous>, transform_indices = @transform_8, window_bounds = array<i64: 1, 1>}, {transform_indices = @transform_9, window_bounds = array<i64: 1, 128>}]} {
    %c0 = arith.constant 0 : index
    %c0_0 = arith.constant 0 : index
    %0 = vector.load %arg1[%c0, %c0_0] : memref<1x128xf32, #tpu.memory_space<vmem>>, vector<1x128xf32>
    %c0_1 = arith.constant 0 : index
    %c0_2 = arith.constant 0 : index
    %1 = vector.load %arg2[%c0_1, %c0_2] : memref<64x1xf32, #tpu.memory_space<vmem>>, vector<64x1xf32>
    %2 = vector.broadcast %1 : vector<64x1xf32> to vector<64x128xf32>
    %3 = vector.broadcast %0 : vector<1x128xf32> to vector<64x128xf32>
    %4 = arith.mulf %2, %3 : vector<64x128xf32>
    %c0_3 = arith.constant 0 : index
    %c0_4 = arith.constant 0 : index
    %5 = vector.load %arg3[%c0_3, %c0_4] : memref<64x1xf32, #tpu.memory_space<vmem>>, vector<64x1xf32>
    %6 = vector.broadcast %5 : vector<64x1xf32> to vector<64x128xf32>
    %7 = arith.addf %4, %6 : vector<64x128xf32>
    %cst = arith.constant 0.000000e+00 : f32
    %8 = vector.broadcast %cst : f32 to vector<64x128xf32>
    %9 = arith.maximumf %7, %8 : vector<64x128xf32>
    %c0_5 = arith.constant 0 : index
    %c0_6 = arith.constant 0 : index
    %10 = vector.load %arg4[%c0_5, %c0_6] : memref<64x64xf32, #tpu.memory_space<vmem>>, vector<64x64xf32>
    %cst_7 = arith.constant dense<0.000000e+00> : vector<64x128xf32>
    %11 = tpu.matmul %10, %9, %cst_7 {dimension_numbers = #tpu.dot_dimension_numbers<[1], [0], [0], [1], [0, 0, 1, 1], [], []>} : vector<64x64xf32>, vector<64x128xf32>, vector<64x128xf32> -> vector<64x128xf32>
    %c0_8 = arith.constant 0 : index
    %c0_9 = arith.constant 0 : index
    %12 = vector.load %arg5[%c0_8, %c0_9] : memref<64x1xf32, #tpu.memory_space<vmem>>, vector<64x1xf32>
    %13 = vector.broadcast %12 : vector<64x1xf32> to vector<64x128xf32>
    %14 = arith.addf %11, %13 : vector<64x128xf32>
    %cst_10 = arith.constant 0.000000e+00 : f32
    %15 = vector.broadcast %cst_10 : f32 to vector<64x128xf32>
    %16 = arith.maximumf %14, %15 : vector<64x128xf32>
    %c0_11 = arith.constant 0 : index
    %c0_12 = arith.constant 0 : index
    %17 = vector.load %arg6[%c0_11, %c0_12] : memref<64x64xf32, #tpu.memory_space<vmem>>, vector<64x64xf32>
    %cst_13 = arith.constant dense<0.000000e+00> : vector<64x128xf32>
    %18 = tpu.matmul %17, %16, %cst_13 {dimension_numbers = #tpu.dot_dimension_numbers<[1], [0], [0], [1], [0, 0, 1, 1], [], []>} : vector<64x64xf32>, vector<64x128xf32>, vector<64x128xf32> -> vector<64x128xf32>
    %c0_14 = arith.constant 0 : index
    %c0_15 = arith.constant 0 : index
    %19 = vector.load %arg7[%c0_14, %c0_15] : memref<64x1xf32, #tpu.memory_space<vmem>>, vector<64x1xf32>
    %20 = vector.broadcast %19 : vector<64x1xf32> to vector<64x128xf32>
    %21 = arith.addf %18, %20 : vector<64x128xf32>
    %cst_16 = arith.constant 0.000000e+00 : f32
    %22 = vector.broadcast %cst_16 : f32 to vector<64x128xf32>
    %23 = arith.maximumf %21, %22 : vector<64x128xf32>
    %c0_17 = arith.constant 0 : index
    %c0_18 = arith.constant 0 : index
    %24 = vector.load %arg8[%c0_17, %c0_18] : memref<1x64xf32, #tpu.memory_space<vmem>>, vector<1x64xf32>
    %cst_19 = arith.constant dense<0.000000e+00> : vector<1x128xf32>
    %25 = tpu.matmul %24, %23, %cst_19 {dimension_numbers = #tpu.dot_dimension_numbers<[1], [0], [0], [1], [0, 0, 1, 1], [], []>} : vector<1x64xf32>, vector<64x128xf32>, vector<1x128xf32> -> vector<1x128xf32>
    %c0_20 = arith.constant 0 : index
    %c0_21 = arith.constant 0 : index
    %26 = vector.load %arg9[%c0_20, %c0_21] : memref<1x1xf32, #tpu.memory_space<vmem>>, vector<1x1xf32>
    %27 = vector.broadcast %26 : vector<1x1xf32> to vector<1x128xf32>
    %28 = arith.addf %25, %27 : vector<1x128xf32>
    %c0_22 = arith.constant 0 : index
    %c0_23 = arith.constant 0 : index
    %29 = vector.load %arg10[%c0_22, %c0_23] : memref<1x128xf32, #tpu.memory_space<vmem>>, vector<1x128xf32>
    tpu.vector_store %arg10[%c0_22, %c0_23], %28 {strides = array<i32>} : memref<1x128xf32, #tpu.memory_space<vmem>>, vector<1x128xf32>,
    return
  }
  func.func @transform_0(%arg0: i32) -> (i32, i32) {
    %c0_i32 = arith.constant 0 : i32
    %c0_i32_0 = arith.constant 0 : i32
    return %c0_i32, %arg0 : i32, i32
  }
  func.func @transform_1(%arg0: i32) -> (i32, i32) {
    %c0_i32 = arith.constant 0 : i32
    %c0_i32_0 = arith.constant 0 : i32
    %c0_i32_1 = arith.constant 0 : i32
    return %c0_i32, %c0_i32_0 : i32, i32
  }
  func.func @transform_2(%arg0: i32) -> (i32, i32) {
    %c0_i32 = arith.constant 0 : i32
    %c0_i32_0 = arith.constant 0 : i32
    %c0_i32_1 = arith.constant 0 : i32
    return %c0_i32, %c0_i32_0 : i32, i32
  }
  func.func @transform_3(%arg0: i32) -> (i32, i32) {
    %c0_i32 = arith.constant 0 : i32
    %c0_i32_0 = arith.constant 0 : i32
    %c0_i32_1 = arith.constant 0 : i32
    return %c0_i32, %c0_i32_0 : i32, i32
  }
  func.func @transform_4(%arg0: i32) -> (i32, i32) {
    %c0_i32 = arith.constant 0 : i32
    %c0_i32_0 = arith.constant 0 : i32
    %c0_i32_1 = arith.constant 0 : i32
    return %c0_i32, %c0_i32_0 : i32, i32
  }
  func.func @transform_5(%arg0: i32) -> (i32, i32) {
    %c0_i32 = arith.constant 0 : i32
    %c0_i32_0 = arith.constant 0 : i32
    %c0_i32_1 = arith.constant 0 : i32
    return %c0_i32, %c0_i32_0 : i32, i32
  }
  func.func @transform_6(%arg0: i32) -> (i32, i32) {
    %c0_i32 = arith.constant 0 : i32
    %c0_i32_0 = arith.constant 0 : i32
    %c0_i32_1 = arith.constant 0 : i32
    return %c0_i32, %c0_i32_0 : i32, i32
  }
  func.func @transform_7(%arg0: i32) -> (i32, i32) {
    %c0_i32 = arith.constant 0 : i32
    %c0_i32_0 = arith.constant 0 : i32
    %c0_i32_1 = arith.constant 0 : i32
    return %c0_i32, %c0_i32_0 : i32, i32
  }
  func.func @transform_8(%arg0: i32) -> (i32, i32) {
    %c0_i32 = arith.constant 0 : i32
    %c0_i32_0 = arith.constant 0 : i32
    %c0_i32_1 = arith.constant 0 : i32
    return %c0_i32, %c0_i32_0 : i32, i32
  }
  func.func @transform_9(%arg0: i32) -> (i32, i32) {
    %c0_i32 = arith.constant 0 : i32
    %c0_i32_0 = arith.constant 0 : i32
    return %c0_i32, %arg0 : i32, i32
  }
}

</mosaic_0001>

<bundles_post_ra>
// kernel: tpu_custom_call.1
= control target key start
LH: loop header
LB: loop body
LE: loop exit
PB: predicated region body
PF: predicated region fallthrough
CT: control target
= control target key end

     0   :  { %s1037_s0 = inlined_call_operand.vmem [shape: f32[1,128], index: 0, kind: input, shape index: {}]   ;;  %s1038_s1 = inlined_call_operand.vmem [shape: f32[64,1], index: 1, kind: input, shape index: {}]   ;;  %s1039_s2 = inlined_call_operand.vmem [shape: f32[64,1], index: 2, kind: input, shape index: {}]   ;;  %s1040_s3 = inlined_call_operand.vmem [shape: f32[64,64], index: 3, kind: input, shape index: {}]   ;;  %s1041_s4 = inlined_call_operand.vmem [shape: f32[64,1], index: 4, kind: input, shape index: {}]   ;;  %s1042_s5 = inlined_call_operand.vmem [shape: f32[64,64], index: 5, kind: input, shape index: {}]   ;;  %s1043_s6 = inlined_call_operand.vmem [shape: f32[64,1], index: 6, kind: input, shape index: {}]   ;;  %s1044_s7 = inlined_call_operand.vmem [shape: f32[1,64], index: 7, kind: input, shape index: {}]   ;;  %s1045_s8 = inlined_call_operand.<no memory space> [shape: f32[1,1], index: 8, kind: input, shape index: {}]   ;;  %s1046_s9 = inlined_call_operand.hbm [shape: f32[1,128], index: 9, kind: output, shape index: {}]  }
   0x1   :  { %v14_v0 = vstv %s1045_s8 }
   0x2   :  { %15 = vst [vmem:[#allocation2] sm:$0x1] %v14_v0 }
   0x3   :  { %v105_v1 = vld [vmem:[%s1039_s2 + $0x38] sm:$0xff]  ;;  %v810_v3 = vmov 0   ;;  %v42_v4 = vld [vmem:[%s1038_s1 + $0x30] sm:$0xff]  ;;  %v41_v5 = vld [vmem:[%s1038_s1 + $0x28] sm:$0xff] }
   0x4   :  { %v43_v2 = vld [vmem:[%s1038_s1 + $0x38] sm:$0xff]  ;;  %787 = vset.pattern.permute.xlu1 %v810_v3  ;;  %786 = vset.pattern.permute.xlu0 %v810_v3  ;;  %v104_v6 = vld [vmem:[%s1039_s2 + $0x30] sm:$0xff]  ;;  %v40_v7 = vld [vmem:[%s1038_s1 + $0x20] sm:$0xff] }
   0x5   :  { %143 = vperm.xlu1 %787, %v105_v1   ;;  %81 = vperm.xlu0 %786, %v43_v2   ;;  %v103_v8 = vld [vmem:[%s1039_s2 + $0x28] sm:$0xff]  ;;  %v39_v9 = vld [vmem:[%s1038_s1 + $0x18] sm:$0xff] }
   0x9   :  { %76 = vperm.xlu0 %786, %v42_v4   ;;  %71 = vperm.xlu1 %787, %v41_v5  }
   0xd   :  { %138 = vperm.xlu0 %786, %v104_v6   ;;  %66 = vperm.xlu1 %787, %v40_v7  }
   0xe   :  { %16 = vsyncpa [#allocation4], 0  ;;  %v102_v10 = vld [vmem:[%s1039_s2 + $0x20] sm:$0xff]  ;;  %v38_v11 = vld [vmem:[%s1038_s1 + $0x10] sm:$0xff]  ;;  %vm218_vm0 = vcmask 523264   ;;  %vm812_vm1 = vmmov 0  }
   0xf   :  { %v101_v12 = vld [vmem:[%s1039_s2 + $0x18] sm:$0xff]  ;;  %v37_v13 = vld [vmem:[%s1038_s1 + $0x8] sm:$0xff]  ;;  %v100_v14 = vld [vmem:[%s1039_s2 + $0x10] sm:$0xff]  ;;  %s813_s30 = smov [#allocation3]  }
  0x10   :  { %v36_v15 = vld [vmem:[%s1038_s1] sm:$0xff]  ;;  %v99_v16 = vld [vmem:[%s1039_s2 + $0x8] sm:$0xff]  ;;  %v177_v18 = vld [vmem:[%s1041_s4 + $0x38] sm:$0xff]  ;;  %s640_s10 = sshll.u32 %s813_s30, 4  ;;  %s641_s10 = int_to_ptr.vmem [resolvable:$true] %s640_s10 }
  0x11   :  { %133 = vperm.xlu0 %786, %v103_v8   ;;  %61 = vperm.xlu1 %787, %v39_v9   ;;  %v98_v17 = vld [vmem:[%s1039_s2] sm:$0xff]  ;;  %v176_v19 = vld [vmem:[%s1041_s4 + $0x30] sm:$0xff]  ;;  %v175_v21 = vld [vmem:[%s1041_s4 + $0x28] sm:$0xff]  ;;  %s788_s11 = scalar_lea.vmem %s641_s10, 16  ;;  %s792_s12 = scalar_lea.vmem %s641_s10, 32 }
  0x12   :  { %v162_v20 = vld [vmem:[%s1040_s3] sm:$0xff]  ;;  %v173_v23 = vld [vmem:[%s1041_s4 + $0x18] sm:$0xff]  ;;  %v172_v24 = vld [vmem:[%s1041_s4 + $0x10] sm:$0xff]  ;;  %p789_p0 = scmp.ne.s32.totalorder %s641_s10, %s788_s11  ;;  %p793_p1 = scmp.lt.s32.totalorder %s641_s10, %s641_s10 }
  0x13   :  { %723 = vmatprep.mubr.msk.f32.mxu0 %vm218_vm0, %v162_v20  ;;  %v174_v22 = vld [vmem:[%s1041_s4 + $0x20] sm:$0xff]  ;;  %v171_v25 = vld [vmem:[%s1041_s4 + $0x8] sm:$0xff]  ;;  %v371_v27 = vld [vmem:[%s1043_s6 + $0x38] sm:$0xff]  ;;  %p794_p2 = scmp.lt.s32.totalorder %s792_s12, %s788_s11 }
  0x14   :  { %v170_v26 = vld [vmem:[%s1041_s4] sm:$0xff]  ;;  %v370_v28 = vld [vmem:[%s1043_s6 + $0x30] sm:$0xff]  ;;  %v369_v29 = vld [vmem:[%s1043_s6 + $0x28] sm:$0xff] }
  0x15   :  { %128 = vperm.xlu0 %786, %v102_v10   ;;  %56 = vperm.xlu1 %787, %v38_v11   ;;  %v368_v30 = vld [vmem:[%s1043_s6 + $0x20] sm:$0xff]  ;;  %v367_v31 = vld [vmem:[%s1043_s6 + $0x18] sm:$0xff]  ;;  %v366_v32 = vld [vmem:[%s1043_s6 + $0x10] sm:$0xff]  ;;  %p795_p3 = por %p794_p2, %p793_p1 }
  0x16   :  { %v365_v33 = vld [vmem:[%s1043_s6 + $0x8] sm:$0xff]  ;;  %v364_v34 = vld [vmem:[%s1043_s6] sm:$0xff] }
  0x17   :  { %v550_v35 = vld [vmem:[#allocation2] sm:$0x1]  ;;  %p796_p4 = pnand %p795_p3, %p789_p0 }
  0x18   :  { %v648_v36 = vld [vmem:[%s1037_s0] ss:$0 sm:$0xff] }
  0x19   :  { %123 = vperm.xlu0 %786, %v101_v12   ;;  %51 = vperm.xlu1 %787, %v37_v13   ;;  %v163_v13 = vld [vmem:[%s1040_s3 + $0x8] sm:$0xff]  ;;  %v356_v20 = vld [vmem:[%s1042_s5] sm:$0xff] }
  0x1a   :  { %751 = vmatprep.mubr.msk.f32.mxu1 %vm218_vm0, %v356_v20 }
  0x1d   :  { %118 = vperm.xlu0 %786, %v100_v14   ;;  %46 = vperm.xlu1 %787, %v36_v15   ;;  %v164_v14 = vld [vmem:[%s1040_s3 + $0x10] sm:$0xff]  ;;  %v165_v15 = vld [vmem:[%s1040_s3 + $0x18] sm:$0xff] }
  0x21   :  { %113 = vperm.xlu0 %786, %v99_v16   ;;  %108 = vperm.xlu1 %787, %v98_v17   ;;  %v166_v16 = vld [vmem:[%s1040_s3 + $0x20] sm:$0xff]  ;;  %v167_v17 = vld [vmem:[%s1040_s3 + $0x28] sm:$0xff] }
  0x25   :  { %215 = vperm.xlu0 %786, %v177_v18   ;;  %210 = vperm.xlu1 %787, %v176_v19   ;;  %v168_v18 = vld [vmem:[%s1040_s3 + $0x30] sm:$0xff]  ;;  %v169_v19 = vld [vmem:[%s1040_s3 + $0x38] sm:$0xff] }
  0x29   :  { %205 = vperm.xlu0 %786, %v175_v21   ;;  %200 = vperm.xlu1 %787, %v174_v22  }
  0x2d   :  { %195 = vperm.xlu0 %786, %v173_v23   ;;  %190 = vperm.xlu1 %787, %v172_v24  }
  0x31   :  { %185 = vperm.xlu0 %786, %v171_v25   ;;  %180 = vperm.xlu1 %787, %v170_v26  }
  0x35   :  { %409 = vperm.xlu0 %786, %v371_v27   ;;  %404 = vperm.xlu1 %787, %v370_v28  }
  0x39   :  { %399 = vperm.xlu0 %786, %v369_v29   ;;  %394 = vperm.xlu1 %787, %v368_v30  }
  0x3d   :  { %389 = vperm.xlu0 %786, %v367_v31   ;;  %384 = vperm.xlu1 %787, %v366_v32  }
  0x41   :  { %379 = vperm.xlu0 %786, %v365_v33   ;;  %374 = vperm.xlu1 %787, %v364_v34  }
  0x45   :  { %553 = vperm.xlu0 %786, %v550_v35  }
  0x80   :  { %v144_v37 = vpop.permute.xlu1 %143  ;;  %v82_v38 = vpop.permute.xlu0 %81 }
  0x81   :  { %v97_v39 = vmul.f32 %v648_v36, %v82_v38 }
  0x83   :  { %v153_v40 = vadd.f32 %v144_v37, %v97_v39 }
  0x84   :  { %v77_v41 = vpop.permute.xlu0 %76  ;;  %v72_v42 = vpop.permute.xlu1 %71 }
  0x85   :  { %v161_v43 = vmax.f32 %v153_v40, 0.0  ;;  %v96_v44 = vmul.f32 %v648_v36, %v77_v41  ;;  %v95_v48 = vmul.f32 %v648_v36, %v72_v42 }
  0x87   :  { %707 = vmatprep.subr.mxu0 %v161_v43 }
  0x88   :  { %v139_v45 = vpop.permute.xlu0 %138  ;;  %v67_v46 = vpop.permute.xlu1 %66  ;;  %708 = vmatpush3.msra.mxu0 %v161_v43 }
  0x89   :  { %v152_v47 = vadd.f32 %v139_v45, %v96_v44  ;;  %v94_v53 = vmul.f32 %v648_v36, %v67_v46 }
  0x8b   :  { %v160_v49 = vmax.f32 %v152_v47, 0.0 }
  0x8c   :  { %v134_v50 = vpop.permute.xlu0 %133  ;;  %v62_v51 = vpop.permute.xlu1 %61 }
  0x8d   :  { %v151_v52 = vadd.f32 %v134_v50, %v95_v48  ;;  %709 = vmatprep.subr.mxu0 %v160_v49  ;;  %v93_v58 = vmul.f32 %v648_v36, %v62_v51 }
  0x8e   :  { %710 = vmatpush3.msra.mxu0 %v160_v49 }
  0x8f   :  { %v159_v54 = vmax.f32 %v151_v52, 0.0 }
  0x90   :  { %v129_v55 = vpop.permute.xlu0 %128  ;;  %v57_v56 = vpop.permute.xlu1 %56 }
  0x91   :  { %v150_v57 = vadd.f32 %v129_v55, %v94_v53  ;;  %711 = vmatprep.subr.mxu0 %v159_v54  ;;  %v92_v63 = vmul.f32 %v648_v36, %v57_v56  ;;  %v357_v53 = vld [vmem:[%s1042_s5 + $0x8] sm:$0xff]  ;;  %v359_v55 = vld [vmem:[%s1042_s5 + $0x18] sm:$0xff]  ;;  %v360_v56 = vld [vmem:[%s1042_s5 + $0x20] sm:$0xff] }
  0x92   :  { %712 = vmatpush3.msra.mxu0 %v159_v54  ;;  %v358_v54 = vld [vmem:[%s1042_s5 + $0x10] sm:$0xff] }
  0x93   :  { %v158_v59 = vmax.f32 %v150_v57, 0.0  ;;  %v361_v57 = vld [vmem:[%s1042_s5 + $0x28] sm:$0xff] }
  0x94   :  { %v124_v60 = vpop.permute.xlu0 %123  ;;  %v52_v61 = vpop.permute.xlu1 %51 }
  0x95   :  { %v149_v62 = vadd.f32 %v124_v60, %v93_v58  ;;  %713 = vmatprep.subr.mxu0 %v158_v59  ;;  %v91_v4 = vmul.f32 %v648_v36, %v52_v61  ;;  %v362_v58 = vld [vmem:[%s1042_s5 + $0x30] sm:$0xff]  ;;  %v811_v60 = vmov 0.0  }
  0x96   :  { %714 = vmatpush3.msra.mxu0 %v158_v59  ;;  %v363_v59 = vld [vmem:[%s1042_s5 + $0x38] sm:$0xff] }
  0x97   :  { %v157_v0 = vmax.f32 %v149_v62, 0.0 }
  0x98   :  { %v119_v1 = vpop.permute.xlu0 %118  ;;  %v47_v2 = vpop.permute.xlu1 %46 }
  0x99   :  { %v148_v3 = vadd.f32 %v119_v1, %v92_v63  ;;  %715 = vmatprep.subr.mxu0 %v157_v0  ;;  %v90_v6 = vmul.f32 %v648_v36, %v47_v2 }
  0x9a   :  { %716 = vmatpush3.msra.mxu0 %v157_v0 }
  0x9b   :  { %v156_v5 = vmax.f32 %v148_v3, 0.0 }
  0x9c   :  { %v114_v7 = vpop.permute.xlu0 %113  ;;  %v109_v8 = vpop.permute.xlu1 %108 }
  0x9d   :  { %v147_v9 = vadd.f32 %v114_v7, %v91_v4  ;;  %v146_v10 = vadd.f32 %v109_v8, %v90_v6  ;;  %717 = vmatprep.subr.mxu0 %v156_v5 }
  0x9e   :  { %718 = vmatpush3.msra.mxu0 %v156_v5 }
  0x9f   :  { %v155_v11 = vmax.f32 %v147_v9, 0.0  ;;  %v154_v12 = vmax.f32 %v146_v10, 0.0 }
  0xa0   :  { %v216_v23 = vpop.permute.xlu0 %215  ;;  %v211_v25 = vpop.permute.xlu1 %210 }
  0xa1   :  { %719 = vmatprep.subr.mxu0 %v155_v11 }
  0xa2   :  { %720 = vmatpush3.msra.mxu0 %v155_v11 }
  0xa3   :  { %721 = vmatprep.subr.mxu0 %v154_v12 }
  0xa4   :  { %722 = vmatpush3.msra.mxu0 %v154_v12  ;;  %v206_v28 = vpop.permute.xlu0 %205  ;;  %v201_v30 = vpop.permute.xlu1 %200 }
  0xa5   :  { %724 = vmatmul.mubr.msk.f32.vlgmr.msra.gmra.mxu0 %vm218_vm0, %v163_v13  ;;  %763 = vmatprep.subr.mxu0 %v811_v60 }
  0xa6   :  { %726 = vmatprep.mubr.msk.f32.mxu0 %vm218_vm0, %v164_v14 }
  0xa8   :  { %v196_v37 = vpop.permute.xlu0 %195  ;;  %v191_v40 = vpop.permute.xlu1 %190 }
  0xa9   :  { %727 = vmatmul.mubr.msk.f32.gmra.mxu0 %vm218_vm0, %v165_v15 }
  0xaa   :  { %729 = vmatprep.mubr.msk.f32.mxu0 %vm218_vm0, %v166_v16 }
  0xac   :  { %v186_v45 = vpop.permute.xlu0 %185  ;;  %v181_v48 = vpop.permute.xlu1 %180 }
  0xad   :  { %730 = vmatmul.mubr.msk.f32.gmra.mxu0 %vm218_vm0, %v167_v17 }
  0xae   :  { %732 = vmatprep.mubr.msk.f32.mxu0 %vm218_vm0, %v168_v18 }
  0xb0   :  { %v410_v63 = vpop.permute.xlu0 %409  ;;  %v405_v1 = vpop.permute.xlu1 %404 }
  0xb1   :  { %733 = vmatmul.mubr.msk.f32.gmra.mxu0 %vm218_vm0, %v169_v19 }
  0xb2   :  { %779 = vmatprep.mubr.msk.f32.mxu0 %vm812_vm1, %v811_v60 }
  0xb4   :  { %v400_v4 = vpop.permute.xlu0 %399  ;;  %v395_v6 = vpop.permute.xlu1 %394 }
  0xb8   :  { %v390_v13 = vpop.permute.xlu0 %389  ;;  %v385_v16 = vpop.permute.xlu1 %384 }
 0x165   :  { %v725_v21 = vpop.f32.mrf.mxu0 }
 0x166   :  { %v315_v46 = vadd.f32 %v725_v21, %v186_v45  ;;  %v380_v21 = vpop.permute.xlu0 %379 }
 0x167   :  { %v309_v22 = vpop.f32.mrf.mxu0 }
 0x168   :  { %v310_v49 = vadd.f32 %v309_v22, %v181_v48  ;;  %v349_v51 = vmax.f32 %v315_v46, 0.0 }
 0x169   :  { %v728_v24 = vpop.f32.mrf.mxu0 }
 0x16a   :  { %v325_v41 = vadd.f32 %v728_v24, %v196_v37  ;;  %v348_v52 = vmax.f32 %v310_v49, 0.0  ;;  %v375_v24 = vpop.permute.xlu1 %374 }
 0x16b   :  { %v319_v26 = vpop.f32.mrf.mxu0 }
 0x16c   :  { %v320_v43 = vadd.f32 %v319_v26, %v191_v40  ;;  %v351_v47 = vmax.f32 %v325_v41, 0.0 }
 0x16d   :  { %v731_v27 = vpop.f32.mrf.mxu0 }
 0x16e   :  { %v335_v34 = vadd.f32 %v731_v27, %v206_v28  ;;  %v350_v50 = vmax.f32 %v320_v43, 0.0 }
 0x16f   :  { %v329_v29 = vpop.f32.mrf.mxu0 }
 0x170   :  { %v330_v38 = vadd.f32 %v329_v29, %v201_v30  ;;  %v353_v42 = vmax.f32 %v335_v34, 0.0  ;;  %v549_v29 = vld [vmem:[%s1044_s7] sm:$0x1]  ;;  %v556_v30 = vlaneseq }
 0x171   :  { %v734_v31 = vpop.f32.mrf.mxu0 }
 0x172   :  { %v345_v32 = vadd.f32 %v734_v31, %v216_v23  ;;  %v352_v44 = vmax.f32 %v330_v38, 0.0  ;;  %v557_v31 = vshrl.u32 %v556_v30, 7 }
 0x173   :  { %v339_v33 = vpop.f32.mrf.mxu0 }
 0x174   :  { %v355_v35 = vmax.f32 %v345_v32, 0.0  ;;  %v340_v36 = vadd.f32 %v339_v33, %v211_v25  ;;  %v558_v32 = vsub.s32 0, %v557_v31  ;;  %v554_v33 = vpop.permute.xlu0 %553 }
 0x176   :  { %v354_v39 = vmax.f32 %v340_v36, 0.0  ;;  %735 = vmatprep.subr.mxu1 %v355_v35  ;;  %v559_v34 = vrot.slane %v554_v33, %v558_v32 }
 0x177   :  { %736 = vmatpush3.msra.mxu1 %v355_v35 }
 0x178   :  { %737 = vmatprep.subr.mxu1 %v354_v39 }
 0x179   :  { %738 = vmatpush3.msra.mxu1 %v354_v39 }
 0x17a   :  { %739 = vmatprep.subr.mxu1 %v353_v42 }
 0x17b   :  { %740 = vmatpush3.msra.mxu1 %v353_v42 }
 0x17c   :  { %741 = vmatprep.subr.mxu1 %v352_v44 }
 0x17d   :  { %742 = vmatpush3.msra.mxu1 %v352_v44 }
 0x17e   :  { %743 = vmatprep.subr.mxu1 %v351_v47 }
 0x17f   :  { %744 = vmatpush3.msra.mxu1 %v351_v47 }
 0x180   :  { %745 = vmatprep.subr.mxu1 %v350_v50 }
 0x181   :  { %746 = vmatpush3.msra.mxu1 %v350_v50 }
 0x182   :  { %747 = vmatprep.subr.mxu1 %v349_v51 }
 0x183   :  { %748 = vmatpush3.msra.mxu1 %v349_v51 }
 0x184   :  { %749 = vmatprep.subr.mxu1 %v348_v52 }
 0x185   :  { %750 = vmatpush3.msra.mxu1 %v348_v52 }
 0x186   :  { %752 = vmatmul.mubr.msk.f32.vlgmr.msra.gmra.mxu1 %vm218_vm0, %v357_v53 }
 0x187   :  { %754 = vmatprep.mubr.msk.f32.mxu1 %vm218_vm0, %v358_v54 }
 0x18a   :  { %755 = vmatmul.mubr.msk.f32.gmra.mxu1 %vm218_vm0, %v359_v55 }
 0x18b   :  { %757 = vmatprep.mubr.msk.f32.mxu1 %vm218_vm0, %v360_v56 }
 0x18e   :  { %758 = vmatmul.mubr.msk.f32.gmra.mxu1 %vm218_vm0, %v361_v57 }
 0x18f   :  { %760 = vmatprep.mubr.msk.f32.mxu1 %vm218_vm0, %v362_v58 }
 0x192   :  { %761 = vmatmul.mubr.msk.f32.gmra.mxu1 %vm218_vm0, %v363_v59 }
 0x246   :  { %v753_v61 = vpop.f32.mrf.mxu1 }
 0x247   :  { %v508_v22 = vadd.f32 %v753_v61, %v380_v21 }
 0x248   :  { %v502_v62 = vpop.f32.mrf.mxu1 }
 0x249   :  { %v503_v25 = vadd.f32 %v502_v62, %v375_v24  ;;  %v542_v27 = vmax.f32 %v508_v22, 0.0 }
 0x24a   :  { %v756_v0 = vpop.f32.mrf.mxu1 }
 0x24b   :  { %v518_v17 = vadd.f32 %v756_v0, %v390_v13  ;;  %v541_v28 = vmax.f32 %v503_v25, 0.0 }
 0x24c   :  { %v512_v2 = vpop.f32.mrf.mxu1 }
 0x24d   :  { %v513_v19 = vadd.f32 %v512_v2, %v385_v16  ;;  %v544_v23 = vmax.f32 %v518_v17, 0.0 }
 0x24e   :  { %v759_v3 = vpop.f32.mrf.mxu1 }
 0x24f   :  { %v528_v10 = vadd.f32 %v759_v3, %v400_v4  ;;  %v543_v26 = vmax.f32 %v513_v19, 0.0 }
 0x250   :  { %v522_v5 = vpop.f32.mrf.mxu1 }
 0x251   :  { %v523_v14 = vadd.f32 %v522_v5, %v395_v6  ;;  %v546_v18 = vmax.f32 %v528_v10, 0.0 }
 0x252   :  { %v762_v7 = vpop.f32.mrf.mxu1 }
 0x253   :  { %v538_v8 = vadd.f32 %v762_v7, %v410_v63  ;;  %v545_v20 = vmax.f32 %v523_v14, 0.0 }
 0x254   :  { %v532_v9 = vpop.f32.mrf.mxu1 }
 0x255   :  { %v548_v11 = vmax.f32 %v538_v8, 0.0  ;;  %v533_v12 = vadd.f32 %v532_v9, %v405_v1 }
 0x257   :  { %v547_v15 = vmax.f32 %v533_v12, 0.0  ;;  %764 = vmatpush3.msra.mxu0 %v548_v11 }
 0x258   :  { %765 = vmatprep.subr.mxu0 %v811_v60 }
 0x259   :  { %766 = vmatpush3.msra.mxu0 %v547_v15 }
 0x25a   :  { %767 = vmatprep.subr.mxu0 %v811_v60 }
 0x25b   :  { %768 = vmatpush3.msra.mxu0 %v546_v18 }
 0x25c   :  { %769 = vmatprep.subr.mxu0 %v811_v60 }
 0x25d   :  { %770 = vmatpush3.msra.mxu0 %v545_v20 }
 0x25e   :  { %771 = vmatprep.subr.mxu0 %v811_v60 }
 0x25f   :  { %772 = vmatpush3.msra.mxu0 %v544_v23 }
 0x260   :  { %773 = vmatprep.subr.mxu0 %v811_v60 }
 0x261   :  { %774 = vmatpush3.msra.mxu0 %v543_v26 }
 0x262   :  { %775 = vmatprep.subr.mxu0 %v811_v60 }
 0x263   :  { %776 = vmatpush3.msra.mxu0 %v542_v27 }
 0x264   :  { %777 = vmatprep.subr.mxu0 %v811_v60 }
 0x265   :  { %778 = vmatpush3.msra.mxu0 %v541_v28 }
 0x266   :  { %780 = vmatmul.mubr.msk.f32.vlgmr.msra.gmra.mxu0 %vm218_vm0, %v549_v29 }
 0x326   :  { %v629_v35 = vpop.f32.mrf.mxu0 }
 0x327   :  { %v630_v36 = vadd.f32 %v629_v35, %v559_v34 }
 0x328   :  { %v781_v37 = vpop.f32.mrf.mxu0 }
 0x329   :  { %633 = vst [vmem:[#allocation3] sm:$0x1] %v630_v36 }
 0x32a   :  { %799 = shalt.err (!%p796_p4)
}
 0x32b   :  { %643 = dma.vmem_to_hbm [thread:$0]  %s641_s10, 16, %s1046_s9, [#allocation4]  }
 0x32c   :  { %808 = dma.done.wait [#allocation4], 16  }
 0x32d   :  { %809 = vsyncadd [#allocation4], 4294967280 }
 0x32e   :  { %647 = vsyncpa [#allocation4], 1 }

</bundles_post_ra>
